<compile_context>
chip_gen: v7x
topology: tpu7x:2x2x1
jax: 0.10.0
libtpu: 0.0.40
codegen_flags: <defaults>
</compile_context>

<pallas_src>
import jax
import jax.numpy as jnp
from jax import lax
from jax.experimental import pallas as pl
from jax.experimental.pallas import tpu as pltpu

# ----------------------------- config ---------------------------------------
BATCH = 2
SEQ = 8
INTERMEDIATE_SIZE = 128   # K
HIDDEN_SIZE = 32          # H
LAYER_NORM_EPS = 1e-12
LANES = 128
# hidden_dropout_prob is irrelevant: module evaluated in inference mode,
# where nn.Dropout is the identity.
# TODO(synk): training-mode dropout (in-kernel PRNG mask) not implemented.


def _round_up(x, m):
    return (x + m - 1) // m * m


def _cdiv(a, b):
    return (a + b - 1) // b


# ----------------------------- kernel ---------------------------------------
def bert_output_kernel(h_ref, res_ref, w_ref, g_ref, bgb_ref, o_ref):
    """y = LayerNorm(h @ W + b + residual), in lane-packed layout.

    h_ref:   (TMP, R*K)  f32   packed intermediate activations (cast in-kernel)
    res_ref: (TMP, L)    f32   packed residual (input_tensor)
    w_ref:   (R*K, L)    bf16  block-diagonal dense weight (R copies of (K,H))
    g_ref:   (L, L)      bf16  segmented-mean matrix (1/H within each H-lane group)
    bgb_ref: (3, L)      f32   row0 = bias, row1 = LN gamma, row2 = LN beta (tiled R times)
    o_ref:   (TMP, L)          packed output
    """
    tm = h_ref.shape[0]
    # Dense: bf16 MXU matmul with f32 accumulation. The f32->bf16 cast of the
    # activations happens here (VPU, hidden under the MXU) instead of a separate
    # HBM pass in the wrapper.
    h = h_ref[...].astype(jnp.bfloat16)
    x = jnp.dot(h, w_ref[...], preferred_element_type=jnp.float32)
    bgb = bgb_ref[...]
    x = x + bgb[0:1, :] + res_ref[...].astype(jnp.float32)
    # Dropout (eval) = identity.
    # LayerNorm over each H-lane group: one fused bf16 MXU matmul produces both
    # segmented E[x] and E[x^2]; var = E[x^2] - mean^2 (one-pass variance).
    xx = jnp.concatenate([x, x * x], axis=0).astype(jnp.bfloat16)       # (2*tm, L)
    stats = jnp.dot(xx, g_ref[...], preferred_element_type=jnp.float32)  # (2*tm, L)
    mean = stats[:tm, :]
    ex2 = stats[tm:, :]
    var = ex2 - mean * mean
    y = (x - mean) * lax.rsqrt(var + LAYER_NORM_EPS) * bgb[1:2, :] + bgb[2:3, :]
    o_ref[...] = y.astype(o_ref.dtype)


# ----------------------------- layer factory ---------------------------------
def make_bert_output(w, b, gamma, beta, *, block_rows=1024):
    """Pack per-layer constants once and return a jitted apply(hidden, residual).

    w: (K, H) = (intermediate_size, hidden_size)  (i.e. PyTorch weight.T)
    """
    K, H = w.shape

    # Lane packing factor: R logical rows per 128-lane packed row.
    R = LANES // H if (H < LANES and LANES % H == 0) else 1
    L = R * H
    # TODO(synk): for large H (R == 1) an in-kernel reduction beats the (L, L)
    # mean matrix; correct either way.

    # ---- per-layer constants, computed ONCE (closed over under jit) ----------
    w_p = jnp.kron(jnp.eye(R, dtype=jnp.float32),
                   w.astype(jnp.float32)).astype(jnp.bfloat16)           # (R*K, L)
    g_mat = (jnp.kron(jnp.eye(R, dtype=jnp.float32),
                      jnp.ones((H, H), dtype=jnp.float32)) / H
             ).astype(jnp.bfloat16)                                      # (L, L)  (1/H exact in bf16 for H=32)
    bgb = jnp.stack([jnp.tile(b.astype(jnp.float32), R),
                     jnp.tile(gamma.astype(jnp.float32), R),
                     jnp.tile(beta.astype(jnp.float32), R)], axis=0)     # (3, L)

    blk = max(16, _round_up(block_rows, 16))

    @jax.jit
    def apply(hidden_states, input_tensor):
        B, S, K_ = hidden_states.shape
        assert K_ == K
        M = B * S
        out_dtype = hidden_states.dtype

        # Pad rows only so M is a multiple of R (at most R-1 rows; usually none).
        M_r = _round_up(M, R)
        h2d = hidden_states.reshape(M, K)
        r2d = input_tensor.reshape(M, H)
        if M_r != M:
            h2d = jnp.pad(h2d, ((0, M_r - M), (0, 0)))
            r2d = jnp.pad(r2d, ((0, M_r - M), (0, 0)))
        M_p = M_r // R
        # Row-major reshapes -> bit-identical packed layout, no data movement.
        h_p = h2d.reshape(M_p, R * K)                 # stays f32 (cast in-kernel)
        r_p = r2d.reshape(M_p, L)

        # Balanced tiles, ragged last tile handled by Pallas (no slab padding).
        num_tiles = max(1, _cdiv(M_p, blk))
        if num_tiles == 1 and M_p > 16:
            num_tiles = 2                             # keep both v7x TCs busy
        tmp = _round_up(_cdiv(M_p, num_tiles), 16)
        num_tiles = _cdiv(M_p, tmp)
        grid = (num_tiles,)

        cost = pl.CostEstimate(
            flops=2 * M_p * (R * K) * L + 2 * (2 * M_p) * L * L,
            transcendentals=M_p * L,
            bytes_accessed=(h_p.size * 4 + r_p.size * 4
                            + w_p.size * 2 + g_mat.size * 2 + bgb.size * 4
                            + M_p * L * jnp.dtype(out_dtype).itemsize),
        )

        out_p = pl.pallas_call(
            bert_output_kernel,
            out_shape=jax.ShapeDtypeStruct((M_p, L), out_dtype),
            grid=grid,
            in_specs=[
                pl.BlockSpec((tmp, R * K), lambda i: (i, 0)),   # packed activations (f32)
                pl.BlockSpec((tmp, L), lambda i: (i, 0)),       # packed residual
                pl.BlockSpec((R * K, L), lambda i: (0, 0)),     # dense weight (resident)
                pl.BlockSpec((L, L), lambda i: (0, 0)),         # LN segmented-mean matrix
                pl.BlockSpec((3, L), lambda i: (0, 0)),         # fused bias/gamma/beta
            ],
            out_specs=pl.BlockSpec((tmp, L), lambda i: (i, 0)),
            compiler_params=pltpu.CompilerParams(
                dimension_semantics=("parallel",)),
            cost_estimate=cost,
        )(h_p, r_p, w_p, g_mat, bgb)

        return out_p.reshape(M_r, H)[:M].reshape(B, S, H)

    return apply


# ----------------------------- reference -------------------------------------
def bert_output_ref(hidden_states, input_tensor, w, b, gamma, beta):
    x = jnp.einsum("bsk,kh->bsh", hidden_states.astype(jnp.float32),
                   w.astype(jnp.float32)) + b
    x = x + input_tensor.astype(jnp.float32)
    mean = jnp.mean(x, axis=-1, keepdims=True)
    var = jnp.mean((x - mean) ** 2, axis=-1, keepdims=True)
    return ((x - mean) * lax.rsqrt(var + LAYER_NORM_EPS) * gamma + beta
            ).astype(hidden_states.dtype)


# ----------------------------- main -------------------------------------------
if __name__ == "__main__":
    key = jax.random.PRNGKey(0)
    k_h, k_r, k_w, k_b, k_g, k_be = jax.random.split(key, 6)

    hidden_states = jax.random.normal(
        k_h, (BATCH, SEQ, INTERMEDIATE_SIZE), dtype=jnp.float32)
    input_tensor = jax.random.normal(
        k_r, (BATCH, SEQ, HIDDEN_SIZE), dtype=jnp.float32)

    # Weight stored as (K, H) = (intermediate_size, hidden_size) so the kernel
    # computes h @ W directly (equivalent to PyTorch's h @ weight.T).
    w = jax.random.normal(k_w, (INTERMEDIATE_SIZE, HIDDEN_SIZE),
                          dtype=jnp.float32) * 0.02
    b = jax.random.normal(k_b, (HIDDEN_SIZE,), dtype=jnp.float32) * 0.02
    gamma = jnp.ones((HIDDEN_SIZE,), dtype=jnp.float32) \
        + 0.01 * jax.random.normal(k_g, (HIDDEN_SIZE,), dtype=jnp.float32)
    beta = 0.01 * jax.random.normal(k_be, (HIDDEN_SIZE,), dtype=jnp.float32)

    bert_output = make_bert_output(w, b, gamma, beta)
    out = bert_output(hidden_states, input_tensor)
    out = jax.block_until_ready(out)

    ref = bert_output_ref(hidden_states, input_tensor, w, b, gamma, beta)
    assert out.shape == (BATCH, SEQ, HIDDEN_SIZE)
    err = jnp.max(jnp.abs(out - ref))
    # bf16 MXU operands (dense + LN stats) vs f32 reference -> ~1e-3-level error.
    assert jnp.allclose(out, ref, atol=1e-2, rtol=1e-2), f"max abs err {err}"

    print("KERNEL_OK")
</pallas_src>

<mosaic_0001>
module attributes {stable_mosaic.version = 11 : i64} {
  func.func @bert_output_kernel(%arg0: i32, %arg1: memref<16x512xf32, #tpu.memory_space<vmem>>, %arg2: memref<16x128xf32, #tpu.memory_space<vmem>>, %arg3: memref<512x128xbf16, #tpu.memory_space<vmem>>, %arg4: memref<128x128xbf16, #tpu.memory_space<vmem>>, %arg5: memref<3x128xf32, #tpu.memory_space<vmem>>, %arg6: memref<16x128xf32, #tpu.memory_space<vmem>>) attributes {dimension_semantics = [#tpu.dimension_semantics<parallel>], iteration_bounds = array<i64: 1>, scalar_prefetch = 0 : i64, scratch_operands = 0 : i64, tpu.core_type = #tpu.core_type<tc>, window_params = [{transform_indices = @transform_0, window_bounds = array<i64: 16, 512>}, {transform_indices = @transform_1, window_bounds = array<i64: 16, 128>}, {pipeline_mode = #tpu.pipeline_mode<synchronous>, transform_indices = @transform_2, window_bounds = array<i64: 512, 128>}, {pipeline_mode = #tpu.pipeline_mode<synchronous>, transform_indices = @transform_3, window_bounds = array<i64: 128, 128>}, {pipeline_mode = #tpu.pipeline_mode<synchronous>, transform_indices = @transform_4, window_bounds = array<i64: 3, 128>}, {transform_indices = @transform_5, window_bounds = array<i64: 16, 128>}]} {
    %c0 = arith.constant 0 : index
    %c0_0 = arith.constant 0 : index
    %0 = vector.load %arg1[%c0, %c0_0] : memref<16x512xf32, #tpu.memory_space<vmem>>, vector<16x512xf32>
    %1 = arith.truncf %0 : vector<16x512xf32> to vector<16x512xbf16>
    %c0_1 = arith.constant 0 : index
    %c0_2 = arith.constant 0 : index
    %2 = vector.load %arg3[%c0_1, %c0_2] : memref<512x128xbf16, #tpu.memory_space<vmem>>, vector<512x128xbf16>
    %cst = arith.constant dense<0.000000e+00> : vector<16x128xf32>
    %3 = tpu.matmul %1, %2, %cst {dimension_numbers = #tpu.dot_dimension_numbers<[1], [0], [0], [1], [0, 0, 1, 1], [], []>} : vector<16x512xbf16>, vector<512x128xbf16>, vector<16x128xf32> -> vector<16x128xf32>
    %c0_3 = arith.constant 0 : index
    %c0_4 = arith.constant 0 : index
    %4 = vector.load %arg5[%c0_3, %c0_4] : memref<3x128xf32, #tpu.memory_space<vmem>>, vector<3x128xf32>
    %5 = vector.extract_strided_slice %4 {offsets = [0, 0], sizes = [1, 128], strides = [1, 1]} : vector<3x128xf32> to vector<1x128xf32>
    %6 = vector.broadcast %5 : vector<1x128xf32> to vector<16x128xf32>
    %7 = arith.addf %3, %6 : vector<16x128xf32>
    %c0_5 = arith.constant 0 : index
    %c0_6 = arith.constant 0 : index
    %8 = vector.load %arg2[%c0_5, %c0_6] : memref<16x128xf32, #tpu.memory_space<vmem>>, vector<16x128xf32>
    %9 = arith.addf %7, %8 : vector<16x128xf32>
    %10 = arith.mulf %9, %9 : vector<16x128xf32>
    %11 = tpu.concatenate %9, %10 in 0 : vector<16x128xf32>, vector<16x128xf32> -> vector<32x128xf32>
    %12 = arith.truncf %11 : vector<32x128xf32> to vector<32x128xbf16>
    %c0_7 = arith.constant 0 : index
    %c0_8 = arith.constant 0 : index
    %13 = vector.load %arg4[%c0_7, %c0_8] : memref<128x128xbf16, #tpu.memory_space<vmem>>, vector<128x128xbf16>
    %cst_9 = arith.constant dense<0.000000e+00> : vector<32x128xf32>
    %14 = tpu.matmul %12, %13, %cst_9 {dimension_numbers = #tpu.dot_dimension_numbers<[1], [0], [0], [1], [0, 0, 1, 1], [], []>} : vector<32x128xbf16>, vector<128x128xbf16>, vector<32x128xf32> -> vector<32x128xf32>
    %15 = vector.extract_strided_slice %14 {offsets = [0, 0], sizes = [16, 128], strides = [1, 1]} : vector<32x128xf32> to vector<16x128xf32>
    %16 = vector.extract_strided_slice %14 {offsets = [16, 0], sizes = [16, 128], strides = [1, 1]} : vector<32x128xf32> to vector<16x128xf32>
    %17 = arith.mulf %15, %15 : vector<16x128xf32>
    %18 = arith.subf %16, %17 : vector<16x128xf32>
    %19 = arith.subf %9, %15 : vector<16x128xf32>
    %cst_10 = arith.constant 9.99999996E-13 : f32
    %20 = vector.broadcast %cst_10 : f32 to vector<16x128xf32>
    %21 = arith.addf %18, %20 : vector<16x128xf32>
    %22 = math.rsqrt %21 : vector<16x128xf32>
    %23 = arith.mulf %19, %22 : vector<16x128xf32>
    %24 = vector.extract_strided_slice %4 {offsets = [1, 0], sizes = [1, 128], strides = [1, 1]} : vector<3x128xf32> to vector<1x128xf32>
    %25 = vector.broadcast %24 : vector<1x128xf32> to vector<16x128xf32>
    %26 = arith.mulf %23, %25 : vector<16x128xf32>
    %27 = vector.extract_strided_slice %4 {offsets = [2, 0], sizes = [1, 128], strides = [1, 1]} : vector<3x128xf32> to vector<1x128xf32>
    %28 = vector.broadcast %27 : vector<1x128xf32> to vector<16x128xf32>
    %29 = arith.addf %26, %28 : vector<16x128xf32>
    %c0_11 = arith.constant 0 : index
    %c0_12 = arith.constant 0 : index
    %30 = vector.load %arg6[%c0_11, %c0_12] : memref<16x128xf32, #tpu.memory_space<vmem>>, vector<16x128xf32>
    tpu.vector_store %arg6[%c0_11, %c0_12], %29 {strides = array<i32>} : memref<16x128xf32, #tpu.memory_space<vmem>>, vector<16x128xf32>,
    return
  }
  func.func @transform_0(%arg0: i32) -> (i32, i32) {
    %c0_i32 = arith.constant 0 : i32
    %c0_i32_0 = arith.constant 0 : i32
    return %arg0, %c0_i32 : i32, i32
  }
  func.func @transform_1(%arg0: i32) -> (i32, i32) {
    %c0_i32 = arith.constant 0 : i32
    %c0_i32_0 = arith.constant 0 : i32
    return %arg0, %c0_i32 : i32, i32
  }
  func.func @transform_2(%arg0: i32) -> (i32, i32) {
    %c0_i32 = arith.constant 0 : i32
    %c0_i32_0 = arith.constant 0 : i32
    %c0_i32_1 = arith.constant 0 : i32
    return %c0_i32, %c0_i32_0 : i32, i32
  }
  func.func @transform_3(%arg0: i32) -> (i32, i32) {
    %c0_i32 = arith.constant 0 : i32
    %c0_i32_0 = arith.constant 0 : i32
    %c0_i32_1 = arith.constant 0 : i32
    return %c0_i32, %c0_i32_0 : i32, i32
  }
  func.func @transform_4(%arg0: i32) -> (i32, i32) {
    %c0_i32 = arith.constant 0 : i32
    %c0_i32_0 = arith.constant 0 : i32
    %c0_i32_1 = arith.constant 0 : i32
    return %c0_i32, %c0_i32_0 : i32, i32
  }
  func.func @transform_5(%arg0: i32) -> (i32, i32) {
    %c0_i32 = arith.constant 0 : i32
    %c0_i32_0 = arith.constant 0 : i32
    return %arg0, %c0_i32 : i32, i32
  }
}

</mosaic_0001>

<bundles_post_ra>
// kernel: apply.1
= control target key start
LH: loop header
LB: loop body
LE: loop exit
PB: predicated region body
PF: predicated region fallthrough
CT: control target
= control target key end

     0   :  { %10 = vsyncpa [#allocation3], 0  ;;  %s798_s18 = smov [#allocation2]   ;;  %s903_s0 = inlined_call_operand.vmem [shape: f32[4,512], index: 0, kind: input, shape index: {}]   ;;  %s904_s1 = inlined_call_operand.vmem [shape: f32[4,128], index: 1, kind: input, shape index: {}]   ;;  %s905_s2 = inlined_call_operand.hbm [shape: bf16[512,128], index: 2, kind: input, shape index: {}]   ;;  %s906_s3 = inlined_call_operand.vmem [shape: bf16[128,128], index: 3, kind: input, shape index: {}]   ;;  %s907_s4 = inlined_call_operand.vmem [shape: f32[3,128], index: 4, kind: input, shape index: {}]   ;;  %s908_s5 = inlined_call_operand.vmem [shape: f32[4,128], index: 5, kind: output, shape index: {}]  }
   0x1   :  { %s20_s19 = sshll.u32 %s798_s18, 4  ;;  %s774_s22 = scalar_lea.hbm %s905_s2, 4096  ;;  %s21_s19 = int_to_ptr.vmem [resolvable:$true] %s20_s19 }
   0x2   :  { %p775_p0 = scmp.ne.s32.totalorder %s905_s2, %s774_s22  ;;  %p778_p1 = scmp.lt.u32.totalorder %s774_s22, %s905_s2 }
   0x4   :  { %p780_p2 = pnand %p778_p1, %p775_p0 }
   0x6   :  { %783 = shalt.err (!%p780_p2)
}
   0x7   :  { %s784_s27 = scalar_lea.vmem %s21_s19, 4096  ;;  %p789_p4 = scmp.lt.s32.totalorder %s21_s19, %s21_s19 }
   0x8   :  { %p785_p3 = scmp.ne.s32.totalorder %s21_s19, %s784_s27  ;;  %p790_p5 = scmp.lt.s32.totalorder %s784_s27, %s784_s27 }
   0xa   :  { %p791_p6 = por %p790_p5, %p789_p4 }
   0xc   :  { %p792_p7 = pnand %p791_p6, %p785_p3 }
   0xe   :  { %795 = shalt.err (!%p792_p7)
}
   0xf   :  { %s799_s28 = smov 64   ;;  %s800_s29 = smov 4  }
  0x10   :  { %26 = dma.hbm_to_vmem [thread:$0]  %s905_s2, 4096, %s21_s19, [#allocation3], %s799_s28, %s799_s28, %s800_s29  }
  0x11   :  { %796 = dma.done.wait [#allocation3], 4096  }
  0x12   :  { %797 = vsyncadd [#allocation3], 4294963200  ;;  %v718_v0 = vld [vmem:[#allocation2 + $0x40] sm:$0xff]   ;;  %v722_v4 = vld [vmem:[#allocation2 + $0x48] sm:$0xff]   ;;  %v136_v52 = vlaneseq }
  0x13   :  { %v719_v1 = vld [vmem:[#allocation2 + $0xc0] sm:$0xff]   ;;  %641 = vmatprep.subr.bf16.mxu0 %v718_v0  ;;  %v723_v5 = vld [vmem:[#allocation2 + $0xc8] sm:$0xff]   ;;  %v726_v8 = vld [vmem:[#allocation2 + $0x50] sm:$0xff]  }
  0x14   :  { %v720_v2 = vld [vmem:[#allocation2] sm:$0xff]   ;;  %663 = vmatprep.subr.bf16.mxu1 %v719_v1  ;;  %v724_v6 = vld [vmem:[#allocation2 + $0x8] sm:$0xff]   ;;  %v727_v9 = vld [vmem:[#allocation2 + $0xd0] sm:$0xff]   ;;  %v137_v53 = vshrl.u32 %v136_v52, 7 }
  0x15   :  { %v721_v3 = vld [vmem:[#allocation2 + $0x80] sm:$0xff]   ;;  %642 = vmatpush3.bf16.msra.mxu0 %v720_v2  ;;  %v725_v7 = vld [vmem:[#allocation2 + $0x88] sm:$0xff]   ;;  %v728_v10 = vld [vmem:[#allocation2 + $0x10] sm:$0xff]  }
  0x16   :  { %664 = vmatpush3.bf16.msra.mxu1 %v721_v3  ;;  %643 = vmatprep.subr.bf16.mxu0 %v722_v4  ;;  %v729_v11 = vld [vmem:[#allocation2 + $0x90] sm:$0xff]   ;;  %v730_v12 = vld [vmem:[#allocation2 + $0x58] sm:$0xff]   ;;  %v734_v16 = vld [vmem:[#allocation2 + $0x60] sm:$0xff]   ;;  %v138_v54 = vsub.s32 0, %v137_v53 }
  0x17   :  { %665 = vmatprep.subr.bf16.mxu1 %v723_v5  ;;  %v731_v13 = vld [vmem:[#allocation2 + $0xd8] sm:$0xff]   ;;  %v735_v17 = vld [vmem:[#allocation2 + $0xe0] sm:$0xff]   ;;  %v738_v20 = vld [vmem:[#allocation2 + $0x68] sm:$0xff]  }
  0x18   :  { %v732_v14 = vld [vmem:[#allocation2 + $0x18] sm:$0xff]   ;;  %v736_v18 = vld [vmem:[#allocation2 + $0x20] sm:$0xff]   ;;  %v739_v21 = vld [vmem:[#allocation2 + $0xe8] sm:$0xff]  }
  0x19   :  { %644 = vmatpush3.bf16.msra.mxu0 %v724_v6  ;;  %v733_v15 = vld [vmem:[#allocation2 + $0x98] sm:$0xff]   ;;  %v737_v19 = vld [vmem:[#allocation2 + $0xa0] sm:$0xff]   ;;  %v740_v22 = vld [vmem:[#allocation2 + $0x28] sm:$0xff]  }
  0x1a   :  { %666 = vmatpush3.bf16.msra.mxu1 %v725_v7  ;;  %645 = vmatprep.subr.bf16.mxu0 %v726_v8  ;;  %v741_v23 = vld [vmem:[#allocation2 + $0xa8] sm:$0xff]   ;;  %v742_v24 = vld [vmem:[#allocation2 + $0x70] sm:$0xff]   ;;  %v746_v28 = vld [vmem:[#allocation2 + $0x78] sm:$0xff]  }
  0x1b   :  { %667 = vmatprep.subr.bf16.mxu1 %v727_v9  ;;  %v743_v25 = vld [vmem:[#allocation2 + $0xf0] sm:$0xff]   ;;  %v747_v29 = vld [vmem:[#allocation2 + $0xf8] sm:$0xff]   ;;  %v762_v43 = vld [vmem:[%s906_s3] sm:$0xff]  }
  0x1c   :  { %v744_v26 = vld [vmem:[#allocation2 + $0x30] sm:$0xff]   ;;  %v748_v30 = vld [vmem:[#allocation2 + $0x38] sm:$0xff]   ;;  %v763_v45 = vld [vmem:[%s906_s3 + $0x8] sm:$0xff]  }
  0x1d   :  { %646 = vmatpush3.bf16.msra.mxu0 %v728_v10  ;;  %v745_v27 = vld [vmem:[#allocation2 + $0xb0] sm:$0xff]   ;;  %v749_v31 = vld [vmem:[#allocation2 + $0xb8] sm:$0xff]   ;;  %v766_v48 = vld [vmem:[%s906_s3 + $0x20] sm:$0xff]  }
  0x1e   :  { %668 = vmatpush3.bf16.msra.mxu1 %v729_v11  ;;  %647 = vmatprep.subr.bf16.mxu0 %v730_v12  ;;  %v750_v32 = vld [vmem:[%s903_s0] ss:$16 sps:$4 sm:$0xff]   ;;  %v752_v33 = vld [vmem:[%s903_s0 + $0x4] ss:$16 sps:$4 sm:$0xff]   ;;  %v756_v37 = vld [vmem:[%s903_s0 + $0x8] ss:$16 sps:$4 sm:$0xff]  }
  0x1f   :  { %669 = vmatprep.subr.bf16.mxu1 %v731_v13  ;;  %v753_v34 = vld [vmem:[%s903_s0 + $0x20] ss:$16 sps:$4 sm:$0xff]   ;;  %v755_v35 = vld [vmem:[%s903_s0 + $0x24] ss:$16 sps:$4 sm:$0xff]   ;;  %v758_v38 = vld [vmem:[%s903_s0 + $0xc] ss:$16 sps:$4 sm:$0xff]  }
  0x20   :  { %v68_v36 = vpack.c.bf16 %v755_v35, %v752_v33  ;;  %v759_v39 = vld [vmem:[%s903_s0 + $0x28] ss:$16 sps:$4 sm:$0xff]   ;;  %v67_v40 = vpack.c.bf16 %v753_v34, %v750_v32  ;;  %v761_v41 = vld [vmem:[%s903_s0 + $0x2c] ss:$16 sps:$4 sm:$0xff]   ;;  %v764_v46 = vld [vmem:[%s906_s3 + $0x10] sm:$0xff]  }
  0x21   :  { %648 = vmatpush3.bf16.msra.mxu0 %v732_v14  ;;  %v69_v42 = vpack.c.bf16 %v759_v39, %v756_v37  ;;  %v70_v44 = vpack.c.bf16 %v761_v41, %v758_v38  ;;  %v765_v47 = vld [vmem:[%s906_s3 + $0x18] sm:$0xff]   ;;  %v767_v49 = vld [vmem:[%s906_s3 + $0x28] sm:$0xff]   ;;  %v768_v50 = vld [vmem:[%s906_s3 + $0x30] sm:$0xff]  }
  0x22   :  { %670 = vmatpush3.bf16.msra.mxu1 %v733_v15  ;;  %649 = vmatprep.subr.bf16.mxu0 %v734_v16  ;;  %v769_v51 = vld [vmem:[%s906_s3 + $0x38] sm:$0xff]   ;;  %v135_v55 = vld [vmem:[%s907_s4] sm:$0x7]  ;;  %v415_v9 = vld [vmem:[%s904_s1 + $0x8] sm:$0xff] }
  0x23   :  { %671 = vmatprep.subr.bf16.mxu1 %v735_v17  ;;  %364 = vmatprep.mubr.bf16.mxu0 %v68_v36  ;;  %v139_v57 = vrot.slane %v135_v55, %v138_v54  ;;  %v414_v4 = vld [vmem:[%s904_s1] sm:$0xff] }
  0x24   :  { %405 = vmatprep.mubr.bf16.mxu1 %v70_v44 }
  0x25   :  { %650 = vmatpush3.bf16.msra.mxu0 %v736_v18 }
  0x26   :  { %672 = vmatpush3.bf16.msra.mxu1 %v737_v19  ;;  %651 = vmatprep.subr.bf16.mxu0 %v738_v20 }
  0x27   :  { %673 = vmatprep.subr.bf16.mxu1 %v739_v21 }
  0x29   :  { %652 = vmatpush3.bf16.msra.mxu0 %v740_v22 }
  0x2a   :  { %674 = vmatpush3.bf16.msra.mxu1 %v741_v23  ;;  %653 = vmatprep.subr.bf16.mxu0 %v742_v24 }
  0x2b   :  { %675 = vmatprep.subr.bf16.mxu1 %v743_v25 }
  0x2d   :  { %654 = vmatpush3.bf16.msra.mxu0 %v744_v26 }
  0x2e   :  { %676 = vmatpush3.bf16.msra.mxu1 %v745_v27  ;;  %655 = vmatprep.subr.bf16.mxu0 %v746_v28  ;;  %v549_v27 = vsub.s32 1, %v137_v53  ;;  %v555_v28 = vsub.s32 2, %v137_v53 }
  0x2f   :  { %677 = vmatprep.subr.bf16.mxu1 %v747_v29 }
  0x30   :  { %v556_v32 = vrot.slane %v135_v55, %v555_v28 }
  0x31   :  { %656 = vmatpush3.bf16.msra.mxu0 %v748_v30  ;;  %v550_v30 = vrot.slane %v135_v55, %v549_v27 }
  0x32   :  { %678 = vmatpush3.bf16.msra.mxu1 %v749_v31  ;;  %695 = vmatprep.subr.bf16.mxu0 %v762_v43 }
  0x34   :  { %365 = vmatmul.mubr.bf16.vlgmr.msra.gmra.mrb[0].mxu0 %v67_v40 }
  0x35   :  { %696 = vmatpush3.bf16.msra.mxu0 %v762_v43  ;;  %406 = vmatmul.mubr.bf16.vlgmr.msra.gmra.mrb[0].mxu1 %v69_v42 }
  0x36   :  { %697 = vmatprep.subr.bf16.mxu0 %v763_v45 }
  0x39   :  { %698 = vmatpush3.bf16.msra.mxu0 %v763_v45 }
  0x3a   :  { %699 = vmatprep.subr.bf16.mxu0 %v764_v46 }
  0x3d   :  { %700 = vmatpush3.bf16.msra.mxu0 %v764_v46 }
  0x3e   :  { %701 = vmatprep.subr.bf16.mxu0 %v765_v47 }
  0x41   :  { %702 = vmatpush3.bf16.msra.mxu0 %v765_v47 }
  0x42   :  { %703 = vmatprep.subr.bf16.mxu0 %v766_v48 }
  0x45   :  { %704 = vmatpush3.bf16.msra.mxu0 %v766_v48 }
  0x46   :  { %705 = vmatprep.subr.bf16.mxu0 %v767_v49 }
  0x49   :  { %706 = vmatpush3.bf16.msra.mxu0 %v767_v49 }
  0x4a   :  { %707 = vmatprep.subr.bf16.mxu0 %v768_v50 }
  0x4d   :  { %708 = vmatpush3.bf16.msra.mxu0 %v768_v50 }
  0x4e   :  { %709 = vmatprep.subr.bf16.mxu0 %v769_v51 }
  0x51   :  { %710 = vmatpush3.bf16.msra.mxu0 %v769_v51 }
 0x107   :  { %v657_v56 = vpop.f32.mrb[0].mxu0 }
 0x108   :  { %v658_v58 = vpop.f32.mrb[1].mxu0  ;;  %v679_v61 = vpop.f32.mrb[0].mxu1 }
 0x109   :  { %v659_v59 = vadd.f32 %v658_v58, %v657_v56  ;;  %v660_v60 = vpop.f32.mrb[2].mxu0  ;;  %v680_v0 = vpop.f32.mrb[1].mxu1 }
 0x10a   :  { %v661_v62 = vpop.f32.mrb[3].mxu0  ;;  %v681_v2 = vadd.f32 %v680_v0, %v679_v61  ;;  %v682_v3 = vpop.f32.mrb[2].mxu1 }
 0x10b   :  { %v367_v63 = vadd.f32 %v659_v59, %v139_v57  ;;  %v662_v1 = vadd.f32 %v661_v62, %v660_v60  ;;  %v683_v6 = vpop.f32.mrb[3].mxu1 }
 0x10c   :  { %v684_v8 = vadd.f32 %v683_v6, %v682_v3 }
 0x10d   :  { %v370_v5 = vadd.f32 %v662_v1, %v139_v57  ;;  %v408_v7 = vadd.f32 %v681_v2, %v367_v63 }
 0x10f   :  { %v416_v10 = vadd.f32 %v414_v4, %v408_v7  ;;  %v411_v11 = vadd.f32 %v684_v8, %v370_v5 }
 0x111   :  { %v417_v12 = vadd.f32 %v415_v9, %v411_v11  ;;  %v418_v13 = vmul.f32 %v416_v10, %v416_v10 }
 0x113   :  { %v419_v14 = vmul.f32 %v417_v12, %v417_v12  ;;  %v420_v15 = vpack.c.bf16 %v417_v12, %v416_v10 }
 0x115   :  { %711 = vmatprep.mubr.bf16.mxu0 %v420_v15  ;;  %v421_v16 = vpack.c.bf16 %v419_v14, %v418_v13 }
 0x117   :  { %712 = vmatmul.mubr.bf16.vlgmr.msra.gmra.mrb[4].mxu0 %v421_v16 }
 0x1ea   :  { %v713_v17 = vpop.f32.mrb[4].mxu0 }
 0x1eb   :  { %v520_v18 = vpop.f32.mrb[5].mxu0 }
 0x1ec   :  { %v535_v19 = vmul.f32 %v520_v18, %v520_v18  ;;  %v714_v20 = vpop.f32.mrb[6].mxu0  ;;  %v539_v29 = vsub.f32 %v416_v10, %v520_v18 }
 0x1ed   :  { %v523_v21 = vpop.f32.mrb[7].mxu0 }
 0x1ee   :  { %v537_v22 = vsub.f32 %v713_v17, %v535_v19  ;;  %v536_v23 = vmul.f32 %v523_v21, %v523_v21 }
 0x1f0   :  { %v541_v24 = vadd.f32 1e-12, %v537_v22  ;;  %v538_v25 = vsub.f32 %v714_v20, %v536_v23 }
 0x1f2   :  { %770 = vrsqrt.f32 %v541_v24  ;;  %v542_v26 = vadd.f32 1e-12, %v538_v25 }
 0x1f4   :  { %772 = vrsqrt.f32 %v542_v26 }
 0x1fc   :  { %v771_v31 = vpop.eup %770 }
 0x1fd   :  { %v545_v33 = vmul.f32 %v771_v31, %v539_v29 }
 0x1fe   :  { %v773_v34 = vpop.eup %772 }
 0x1ff   :  { %v551_v35 = vmul.f32 %v550_v30, %v545_v33 }
 0x201   :  { %v557_v36 = vadd.f32 %v556_v32, %v551_v35 }
 0x203   :  { %559 = vst [vmem:[#allocation4] sm:$0xff] %v557_v36 }
 0x20a   :  { %v578_v37 = vld [vmem:[#allocation4] sm:$0xf] }
 0x20b   :  { %579 = vst [vmem:[%s908_s5] sm:$0xf] %v578_v37 }
 0x20c   :  { %596 = vsyncpa [#allocation3], 1 }

</bundles_post_ra>
